<compile_context>
chip_gen: v7x
topology: tpu7x:2x2x1
jax: 0.10.0
libtpu: 0.0.40
codegen_flags: <defaults>
</compile_context>

<pallas_src>
from functools import partial

import jax
import jax.numpy as jnp
from jax.experimental import pallas as pl
from jax.experimental.pallas import tpu as pltpu

V = 7       # vocab size
D = 4       # embedding dim
L = 2       # tokens per example (L * D == 8 == Linear in_features)
LANES = 128


def _emb_linear_kernel(packed_ref, m_ref, out_ref):
    # packed_ref: (TR, 128) int32 VMEM -- packed = idx0 | (idx1 << 3)
    # m_ref:      (V, L)    f32   SMEM -- M'[v, p] = emb[v].w[p] + bias/L
    # out_ref:    (TR, 128) f32   VMEM
    packed = packed_ref[...]
    acc = None
    for p in range(L):                      # static -> unrolled
        shift = 3 * p
        # bit-tests of the index for position p, taken directly from the packed word
        b0 = (packed & (1 << shift)) != 0
        b1 = (packed & (2 << shift)) != 0
        b2 = (packed & (4 << shift)) != 0
        m0 = m_ref[0, p]
        m1 = m_ref[1, p]
        m2 = m_ref[2, p]
        m3 = m_ref[3, p]
        m4 = m_ref[4, p]
        m5 = m_ref[5, p]
        m6 = m_ref[6, p]
        # balanced select tree over the 7 table entries (6 selects)
        a = jnp.where(b0, m1, m0)
        b = jnp.where(b0, m3, m2)
        c = jnp.where(b0, m5, m4)
        e = jnp.where(b1, b, a)
        f = jnp.where(b1, m6, c)
        r = jnp.where(b2, f, e)
        acc = r if acc is None else acc + r
    out_ref[...] = acc.astype(out_ref.dtype)


@partial(jax.jit, static_argnames=("block_rows",))
def embedding_linear(x, emb_w, fc_w, fc_b, *, block_rows=2048):
    """x: (B, L) int; emb_w: (V, D) f32; fc_w: (1, L*D) f32; fc_b: (1,) f32."""
    assert block_rows % 8 == 0
    B = x.shape[0]

    # Batch-independent precompute (tiny; fuses with the rest under jit).
    w2 = fc_w.reshape(L, D).astype(jnp.float32)           # matches h.view(B, -1) order
    M = emb_w.astype(jnp.float32) @ w2.T                  # (V, L)
    M = M + fc_b[0].astype(jnp.float32) / L               # fold bias into the table

    # Pack both token indices into one int32 (single fused elementwise pass).
    # NOTE: out-of-range indices (>= 7) silently map to entry 6; valid inputs match
    # the PyTorch module exactly.
    xi = x.astype(jnp.int32)
    packed = (xi[:, 0] & 7) | ((xi[:, 1] & 7) << 3)       # (B,)

    R = pl.cdiv(B, LANES)                                 # rows of 128 batch elements
    if R <= block_rows:
        TR = R                                            # single whole-array block
        Rp = R
    else:
        TR = block_rows                                   # multiple of 8 -> dense vregs
        Rp = pl.cdiv(R, TR) * TR
    Bp = Rp * LANES
    if Bp != B:
        packed = jnp.pad(packed, (0, Bp - B))             # pad value 0 -> valid indices
    packed2d = packed.reshape(Rp, LANES)                  # batch on sublane AND lane axes

    out = pl.pallas_call(
        _emb_linear_kernel,
        out_shape=jax.ShapeDtypeStruct((Rp, LANES), jnp.float32),
        grid_spec=pltpu.PrefetchScalarGridSpec(
            num_scalar_prefetch=0,
            grid=(Rp // TR,),
            in_specs=[
                pl.BlockSpec((TR, LANES), lambda i: (i, 0)),               # packed idx
                pl.BlockSpec(memory_space=pltpu.MemorySpace.SMEM),         # M' (V, L)
            ],
            out_specs=pl.BlockSpec((TR, LANES), lambda i: (i, 0)),
        ),
        compiler_params=pltpu.CompilerParams(
            dimension_semantics=("parallel",)),
    )(packed2d, M)

    return out.reshape(Bp)[:B].reshape(B, 1)


def _reference(x, emb_w, fc_w, fc_b):
    h = emb_w[x]                                          # (B, L, D)
    return h.reshape(x.shape[0], L * D) @ fc_w.T + fc_b   # (B, 1)


if __name__ == "__main__":
    key = jax.random.PRNGKey(0)
    k_emb, k_w, k_b, k_x, k_x2 = jax.random.split(key, 5)

    # Deterministic parameter init (mirrors nn.Embedding / nn.Linear defaults).
    emb_w = jax.random.normal(k_emb, (V, D), dtype=jnp.float32)            # N(0, 1)
    bound = 1.0 / float(jnp.sqrt(jnp.float32(L * D)))
    fc_w = jax.random.uniform(k_w, (1, L * D), jnp.float32, -bound, bound)
    fc_b = jax.random.uniform(k_b, (1,), jnp.float32, -bound, bound)

    # Small batch: single whole-array block, no grid overhead.
    B = 8
    x = jax.random.randint(k_x, (B, L), 0, V, dtype=jnp.int32)
    out = jax.block_until_ready(embedding_linear(x, emb_w, fc_w, fc_b))
    ref = _reference(x, emb_w, fc_w, fc_b)
    assert out.shape == (B, 1)
    assert jnp.allclose(out, ref, atol=1e-5, rtol=1e-5)

    # Larger, ragged batch exercising the parallel multi-block grid path
    # (R=24 rows, TR=8 -> grid=(3,), tail padded from 3000 to 3072).
    B2 = 3000
    x2 = jax.random.randint(k_x2, (B2, L), 0, V, dtype=jnp.int32)
    out2 = jax.block_until_ready(
        embedding_linear(x2, emb_w, fc_w, fc_b, block_rows=8))
    ref2 = _reference(x2, emb_w, fc_w, fc_b)
    assert out2.shape == (B2, 1)
    assert jnp.allclose(out2, ref2, atol=1e-5, rtol=1e-5)

    print("KERNEL_OK")
</pallas_src>

<mosaic_0001>
module attributes {stable_mosaic.version = 11 : i64} {
  func.func @_emb_linear_kernel(%arg0: i32, %arg1: memref<1x128xi32, #tpu.memory_space<vmem>>, %arg2: memref<7x2xf32, #tpu.memory_space<smem>>, %arg3: memref<1x128xf32, #tpu.memory_space<vmem>>) attributes {dimension_semantics = [#tpu.dimension_semantics<parallel>], iteration_bounds = array<i64: 1>, scalar_prefetch = 0 : i64, scratch_operands = 0 : i64, tpu.core_type = #tpu.core_type<tc>, window_params = [{transform_indices = @transform_0, window_bounds = array<i64: 1, 128>}, {transform_indices = @transform_1, window_bounds = array<i64: 7, 2>}, {transform_indices = @transform_2, window_bounds = array<i64: 1, 128>}]} {
    %c0 = arith.constant 0 : index
    %c0_0 = arith.constant 0 : index
    %0 = vector.load %arg1[%c0, %c0_0] : memref<1x128xi32, #tpu.memory_space<vmem>>, vector<1x128xi32>
    %c1_i32 = arith.constant 1 : i32
    %1 = vector.broadcast %c1_i32 : i32 to vector<1x128xi32>
    %2 = arith.andi %0, %1 : vector<1x128xi32>
    %c0_i32 = arith.constant 0 : i32
    %3 = vector.broadcast %c0_i32 : i32 to vector<1x128xi32>
    %4 = arith.cmpi ne, %2, %3 : vector<1x128xi32>
    %c2_i32 = arith.constant 2 : i32
    %5 = vector.broadcast %c2_i32 : i32 to vector<1x128xi32>
    %6 = arith.andi %0, %5 : vector<1x128xi32>
    %c0_i32_1 = arith.constant 0 : i32
    %7 = vector.broadcast %c0_i32_1 : i32 to vector<1x128xi32>
    %8 = arith.cmpi ne, %6, %7 : vector<1x128xi32>
    %c4_i32 = arith.constant 4 : i32
    %9 = vector.broadcast %c4_i32 : i32 to vector<1x128xi32>
    %10 = arith.andi %0, %9 : vector<1x128xi32>
    %c0_i32_2 = arith.constant 0 : i32
    %11 = vector.broadcast %c0_i32_2 : i32 to vector<1x128xi32>
    %12 = arith.cmpi ne, %10, %11 : vector<1x128xi32>
    %c0_3 = arith.constant 0 : index
    %c0_4 = arith.constant 0 : index
    %13 = memref.load %arg2[%c0_3, %c0_4] : memref<7x2xf32, #tpu.memory_space<smem>>
    %c1 = arith.constant 1 : index
    %c0_5 = arith.constant 0 : index
    %14 = memref.load %arg2[%c1, %c0_5] : memref<7x2xf32, #tpu.memory_space<smem>>
    %c2 = arith.constant 2 : index
    %c0_6 = arith.constant 0 : index
    %15 = memref.load %arg2[%c2, %c0_6] : memref<7x2xf32, #tpu.memory_space<smem>>
    %c3 = arith.constant 3 : index
    %c0_7 = arith.constant 0 : index
    %16 = memref.load %arg2[%c3, %c0_7] : memref<7x2xf32, #tpu.memory_space<smem>>
    %c4 = arith.constant 4 : index
    %c0_8 = arith.constant 0 : index
    %17 = memref.load %arg2[%c4, %c0_8] : memref<7x2xf32, #tpu.memory_space<smem>>
    %c5 = arith.constant 5 : index
    %c0_9 = arith.constant 0 : index
    %18 = memref.load %arg2[%c5, %c0_9] : memref<7x2xf32, #tpu.memory_space<smem>>
    %c6 = arith.constant 6 : index
    %c0_10 = arith.constant 0 : index
    %19 = memref.load %arg2[%c6, %c0_10] : memref<7x2xf32, #tpu.memory_space<smem>>
    %20 = vector.broadcast %14 : f32 to vector<1x128xf32>
    %21 = vector.broadcast %13 : f32 to vector<1x128xf32>
    %22 = arith.select %4, %20, %21 : vector<1x128xi1>, vector<1x128xf32>
    %23 = vector.broadcast %16 : f32 to vector<1x128xf32>
    %24 = vector.broadcast %15 : f32 to vector<1x128xf32>
    %25 = arith.select %4, %23, %24 : vector<1x128xi1>, vector<1x128xf32>
    %26 = vector.broadcast %18 : f32 to vector<1x128xf32>
    %27 = vector.broadcast %17 : f32 to vector<1x128xf32>
    %28 = arith.select %4, %26, %27 : vector<1x128xi1>, vector<1x128xf32>
    %29 = arith.select %8, %25, %22 : vector<1x128xi1>, vector<1x128xf32>
    %30 = vector.broadcast %19 : f32 to vector<1x128xf32>
    %31 = arith.select %8, %30, %28 : vector<1x128xi1>, vector<1x128xf32>
    %32 = arith.select %12, %31, %29 : vector<1x128xi1>, vector<1x128xf32>
    %c8_i32 = arith.constant 8 : i32
    %33 = vector.broadcast %c8_i32 : i32 to vector<1x128xi32>
    %34 = arith.andi %0, %33 : vector<1x128xi32>
    %c0_i32_11 = arith.constant 0 : i32
    %35 = vector.broadcast %c0_i32_11 : i32 to vector<1x128xi32>
    %36 = arith.cmpi ne, %34, %35 : vector<1x128xi32>
    %c16_i32 = arith.constant 16 : i32
    %37 = vector.broadcast %c16_i32 : i32 to vector<1x128xi32>
    %38 = arith.andi %0, %37 : vector<1x128xi32>
    %c0_i32_12 = arith.constant 0 : i32
    %39 = vector.broadcast %c0_i32_12 : i32 to vector<1x128xi32>
    %40 = arith.cmpi ne, %38, %39 : vector<1x128xi32>
    %c32_i32 = arith.constant 32 : i32
    %41 = vector.broadcast %c32_i32 : i32 to vector<1x128xi32>
    %42 = arith.andi %0, %41 : vector<1x128xi32>
    %c0_i32_13 = arith.constant 0 : i32
    %43 = vector.broadcast %c0_i32_13 : i32 to vector<1x128xi32>
    %44 = arith.cmpi ne, %42, %43 : vector<1x128xi32>
    %c0_14 = arith.constant 0 : index
    %c1_15 = arith.constant 1 : index
    %45 = memref.load %arg2[%c0_14, %c1_15] : memref<7x2xf32, #tpu.memory_space<smem>>
    %c1_16 = arith.constant 1 : index
    %c1_17 = arith.constant 1 : index
    %46 = memref.load %arg2[%c1_16, %c1_17] : memref<7x2xf32, #tpu.memory_space<smem>>
    %c2_18 = arith.constant 2 : index
    %c1_19 = arith.constant 1 : index
    %47 = memref.load %arg2[%c2_18, %c1_19] : memref<7x2xf32, #tpu.memory_space<smem>>
    %c3_20 = arith.constant 3 : index
    %c1_21 = arith.constant 1 : index
    %48 = memref.load %arg2[%c3_20, %c1_21] : memref<7x2xf32, #tpu.memory_space<smem>>
    %c4_22 = arith.constant 4 : index
    %c1_23 = arith.constant 1 : index
    %49 = memref.load %arg2[%c4_22, %c1_23] : memref<7x2xf32, #tpu.memory_space<smem>>
    %c5_24 = arith.constant 5 : index
    %c1_25 = arith.constant 1 : index
    %50 = memref.load %arg2[%c5_24, %c1_25] : memref<7x2xf32, #tpu.memory_space<smem>>
    %c6_26 = arith.constant 6 : index
    %c1_27 = arith.constant 1 : index
    %51 = memref.load %arg2[%c6_26, %c1_27] : memref<7x2xf32, #tpu.memory_space<smem>>
    %52 = vector.broadcast %46 : f32 to vector<1x128xf32>
    %53 = vector.broadcast %45 : f32 to vector<1x128xf32>
    %54 = arith.select %36, %52, %53 : vector<1x128xi1>, vector<1x128xf32>
    %55 = vector.broadcast %48 : f32 to vector<1x128xf32>
    %56 = vector.broadcast %47 : f32 to vector<1x128xf32>
    %57 = arith.select %36, %55, %56 : vector<1x128xi1>, vector<1x128xf32>
    %58 = vector.broadcast %50 : f32 to vector<1x128xf32>
    %59 = vector.broadcast %49 : f32 to vector<1x128xf32>
    %60 = arith.select %36, %58, %59 : vector<1x128xi1>, vector<1x128xf32>
    %61 = arith.select %40, %57, %54 : vector<1x128xi1>, vector<1x128xf32>
    %62 = vector.broadcast %51 : f32 to vector<1x128xf32>
    %63 = arith.select %40, %62, %60 : vector<1x128xi1>, vector<1x128xf32>
    %64 = arith.select %44, %63, %61 : vector<1x128xi1>, vector<1x128xf32>
    %65 = arith.addf %32, %64 : vector<1x128xf32>
    %c0_28 = arith.constant 0 : index
    %c0_29 = arith.constant 0 : index
    %66 = vector.load %arg3[%c0_28, %c0_29] : memref<1x128xf32, #tpu.memory_space<vmem>>, vector<1x128xf32>
    tpu.vector_store %arg3[%c0_28, %c0_29], %65 {strides = array<i32>} : memref<1x128xf32, #tpu.memory_space<vmem>>, vector<1x128xf32>,
    return
  }
  func.func @transform_0(%arg0: i32) -> (i32, i32) {
    %c0_i32 = arith.constant 0 : i32
    %c0_i32_0 = arith.constant 0 : i32
    return %arg0, %c0_i32 : i32, i32
  }
  func.func @transform_1(%arg0: i32) -> (i32, i32) {
    %c0_i32 = arith.constant 0 : i32
    %c0_i32_0 = arith.constant 0 : i32
    %c0_i32_1 = arith.constant 0 : i32
    return %c0_i32, %c0_i32_0 : i32, i32
  }
  func.func @transform_2(%arg0: i32) -> (i32, i32) {
    %c0_i32 = arith.constant 0 : i32
    %c0_i32_0 = arith.constant 0 : i32
    return %arg0, %c0_i32 : i32, i32
  }
}

</mosaic_0001>

<bundles_post_ra>
// kernel: embedding_linear.1
= control target key start
LH: loop header
LB: loop body
LE: loop exit
PB: predicated region body
PF: predicated region fallthrough
CT: control target
= control target key end

     0   :  { %7 = vsyncpa [#allocation3], 0  ;;  %s182_s0 = inlined_call_operand.vmem [shape: s32[1,128], index: 0, kind: input, shape index: {}]   ;;  %s183_s1 = inlined_call_operand.vmem [shape: f32[7,2], index: 1, kind: input, shape index: {}]   ;;  %s184_s2 = inlined_call_operand.vmem [shape: f32[1,128], index: 2, kind: output, shape index: {}]  }
   0x1   :  { %s16_s11 = sshll.u32 %s183_s1, 4  ;;  %s17_s11 = int_to_ptr.vmem [resolvable:$true] %s16_s11 }
   0x2   :  { %s98_s12 = scalar_lea.vmem %s17_s11, 128  ;;  %p103_p1 = scmp.lt.s32.totalorder %s17_s11, %s17_s11 }
   0x3   :  { %p99_p0 = scmp.ne.s32.totalorder %s17_s11, %s98_s12  ;;  %p104_p2 = scmp.lt.s32.totalorder %s98_s12, %s98_s12 }
   0x5   :  { %p105_p3 = por %p104_p2, %p103_p1 }
   0x7   :  { %p106_p4 = pnand %p105_p3, %p99_p0 }
   0x9   :  { %109 = shalt.err (!%p106_p4)
}
   0xa   :  { %s112_s13 = smov [#allocation2]  }
   0xb   :  { %19 = dma.vmem_to_smem %s17_s11, 128, %s112_s13, [#allocation3]  }
   0xc   :  { %110 = dma.done.wait [#allocation3], 128  }
   0xd   :  { %111 = vsyncadd [#allocation3], 4294967168 }
   0xe   :  { %23 = sfence }
   0xf   :  { %v24_v0 = vld [vmem:[%s182_s0] sm:$0x1]  ;;  %s31_s16 = sld [smem:[#allocation2]]  ;;  %s134_s22 = sld [smem:[#allocation2 + $0x1]] }
  0x10   :  { %s84_s17 = sld [smem:[#allocation2 + $0x80]]  ;;  %v25_v1 = vand.u32 1, %v24_v0  ;;  %v27_v2 = vand.u32 2, %v24_v0  ;;  %v29_v3 = vand.u32 4, %v24_v0  ;;  %v51_v5 = vand.u32 8, %v24_v0  ;;  %s91_s23 = sld [smem:[#allocation2 + $0x81]] }
  0x11   :  { %s85_s1 = sld [smem:[#allocation2 + $0x100]]  ;;  %s92_s24 = sld [smem:[#allocation2 + $0x101]]  ;;  %v53_v8 = vand.u32 16, %v24_v0  ;;  %v55_v10 = vand.u32 32, %v24_v0 }
  0x12   :  { %s86_s18 = sld [smem:[#allocation2 + $0x180]]  ;;  %vm136_vm0 = vcmp.ne.s32.totalorder %v25_v1, 0  ;;  %s93_s0 = sld [smem:[#allocation2 + $0x181]]  ;;  %vm140_vm1 = vcmp.ne.s32.totalorder %v27_v2, 0  ;;  %vm146_vm2 = vcmp.ne.s32.totalorder %v29_v3, 0  ;;  %vm152_vm3 = vcmp.ne.s32.totalorder %v51_v5, 0 }
  0x13   :  { %s87_s19 = sld [smem:[#allocation2 + $0x200]]  ;;  %s94_s25 = sld [smem:[#allocation2 + $0x201]]  ;;  %vm158_vm4 = vcmp.ne.s32.totalorder %v53_v8, 0  ;;  %vm56_vm5 = vcmp.ne.s32.totalorder %v55_v10, 0 }
  0x14   :  { %s88_s20 = sld [smem:[#allocation2 + $0x280]]  ;;  %s95_s26 = sld [smem:[#allocation2 + $0x281]] }
  0x15   :  { %s89_s21 = sld [smem:[#allocation2 + $0x300]]  ;;  %v39_v7 = vstv %s31_s16  ;;  %s96_s27 = sld [smem:[#allocation2 + $0x301]]  ;;  %v65_v22 = vstv %s134_s22 }
  0x16   :  { %v38_v6 = vstv %s84_s17  ;;  %v64_v25 = vstv %s91_s23 }
  0x17   :  { %v42_v9 = vstv %s85_s1  ;;  %v40_v12 = vsel %vm136_vm0, %v38_v6, %v39_v7  ;;  %v68_v26 = vstv %s92_s24  ;;  %v66_v27 = vsel %vm152_vm3, %v64_v25, %v65_v22 }
  0x18   :  { %v41_v13 = vstv %s86_s18  ;;  %v67_v28 = vstv %s93_s0 }
  0x19   :  { %v45_v14 = vstv %s87_s19  ;;  %v43_v16 = vsel %vm136_vm0, %v41_v13, %v42_v9  ;;  %v71_v29 = vstv %s94_s25  ;;  %v69_v30 = vsel %vm152_vm3, %v67_v28, %v68_v26 }
  0x1a   :  { %v44_v17 = vstv %s88_s20  ;;  %v47_v23 = vsel %vm140_vm1, %v43_v16, %v40_v12  ;;  %v70_v31 = vstv %s95_s26  ;;  %v73_v35 = vsel %vm158_vm4, %v69_v30, %v66_v27 }
  0x1b   :  { %v46_v19 = vsel %vm136_vm0, %v44_v17, %v45_v14  ;;  %v48_v20 = vstv %s89_s21  ;;  %v74_v32 = vstv %s96_s27  ;;  %v72_v34 = vsel %vm152_vm3, %v70_v31, %v71_v29 }
  0x1c   :  { %v49_v24 = vsel %vm140_vm1, %v48_v20, %v46_v19  ;;  %v75_v36 = vsel %vm158_vm4, %v74_v32, %v72_v34 }
  0x1d   :  { %v50_v33 = vsel %vm146_vm2, %v49_v24, %v47_v23  ;;  %v76_v37 = vsel %vm56_vm5, %v75_v36, %v73_v35 }
  0x1e   :  { %v77_v38 = vadd.f32 %v76_v37, %v50_v33 }
  0x20   :  { %78 = vst [vmem:[%s184_s2] sm:$0x1] %v77_v38 }
  0x21   :  { %83 = vsyncpa [#allocation3], 1 }

</bundles_post_ra>
